<compile_context>
chip_gen: v6e
topology: v6e:2x2x1
jax: 0.10.0
libtpu: 0.0.40
codegen_flags: <defaults>
</compile_context>

<pallas_src>
import functools
import math

import jax
import jax.numpy as jnp
from jax import lax
from jax.experimental import pallas as pl
from jax.experimental.pallas import tpu as pltpu

_NEG_INF = -1e30  # finite "minus infinity" (mirrors torch's -finfo.max masking)


def _round_up(x, m):
    return (x + m - 1) // m * m


def _pick_tile(dim, cap, gran):
    """Return (padded_dim, tile). Pads `dim` up to `gran`; if that fits under `cap`
    the whole (padded) dim is one tile, otherwise the largest multiple of `gran`
    <= cap that divides the padded dim (so no extra padding waste)."""
    dp = _round_up(dim, gran)
    if dp <= cap:
        return dp, dp
    t = cap
    while dp % t:
        t -= gran
    return dp, t


def _vmem_limit(*nbytes):
    """Actual tile bytes + fixed headroom, capped well under v7x's 64 MiB VMEM."""
    need = int(sum(nbytes))
    return int(min(max(need + (8 << 20), 16 << 20), 40 << 20))


# -----------------------------------------------------------------------------
# Tiled linear:  y = x @ w_t + b      (w_t already transposed to (K, N), bf16)
# -----------------------------------------------------------------------------
def _matmul_bias_kernel(x_ref, w_ref, b_ref, o_ref, acc_ref):
    @pl.when(pl.program_id(2) == 0)
    def _():
        acc_ref[...] = jnp.zeros_like(acc_ref)

    # bf16 operands on the MXU (activation cast is a no-op if it already matches),
    # f32 accumulation in VMEM scratch.
    acc_ref[...] += jnp.dot(x_ref[...].astype(w_ref.dtype), w_ref[...],
                            preferred_element_type=jnp.float32)

    @pl.when(pl.program_id(2) == pl.num_programs(2) - 1)
    def _():
        o_ref[...] = (acc_ref[...] + b_ref[...]).astype(o_ref.dtype)


def linear(x2d, w_t, bias=None, *, out_dtype=None):
    """x2d: (M, K), w_t: (K, N), bias: (N,) or None -> (M, N) in out_dtype."""
    M, K = x2d.shape
    Kw, N = w_t.shape
    assert K == Kw
    out_dtype = x2d.dtype if out_dtype is None else out_dtype

    Mp, tm = _pick_tile(M, 512, 8)        # divisor search -> usually no row padding
    Np, tn = _pick_tile(N, 512, 128)
    Kp, tk = _pick_tile(K, 1024, 128)

    xp = x2d if (Mp == M and Kp == K) else jnp.pad(x2d, ((0, Mp - M), (0, Kp - K)))
    wp = w_t if (Kp == K and Np == N) else jnp.pad(w_t, ((0, Kp - K), (0, Np - N)))
    if bias is None:
        bp = jnp.zeros((1, Np), jnp.float32)
    else:
        bp = bias.astype(jnp.float32).reshape(1, N)
        if Np != N:
            bp = jnp.pad(bp, ((0, 0), (0, Np - N)))

    x_isz = jnp.dtype(xp.dtype).itemsize
    w_isz = jnp.dtype(wp.dtype).itemsize
    o_isz = jnp.dtype(out_dtype).itemsize
    vmem = _vmem_limit(2 * tm * tk * x_isz, 2 * tk * tn * w_isz, 2 * tn * 4,
                       2 * tm * tn * o_isz, tm * tn * 4)

    out = pl.pallas_call(
        _matmul_bias_kernel,
        out_shape=jax.ShapeDtypeStruct((Mp, Np), out_dtype),
        grid_spec=pltpu.PrefetchScalarGridSpec(
            num_scalar_prefetch=0,
            grid=(Mp // tm, Np // tn, Kp // tk),
            in_specs=[
                pl.BlockSpec((tm, tk), lambda i, j, k: (i, k)),
                pl.BlockSpec((tk, tn), lambda i, j, k: (k, j)),
                pl.BlockSpec((1, tn), lambda i, j, k: (0, j)),
            ],
            out_specs=pl.BlockSpec((tm, tn), lambda i, j, k: (i, j)),
            scratch_shapes=[pltpu.VMEM((tm, tn), jnp.float32)],
        ),
        compiler_params=pltpu.CompilerParams(
            dimension_semantics=("parallel", "parallel", "arbitrary"),
            vmem_limit_bytes=vmem),
    )(xp, wp, bp)
    if Mp != M or Np != N:
        out = out[:M, :N]
    return out


# -----------------------------------------------------------------------------
# Flash attention over the (B, N, heads*dim_head) layout, fused K|V operand.
# -----------------------------------------------------------------------------
def _flash_attn_kernel(q_ref, kv_ref, o_ref, m_sc, l_sc, acc_sc, *,
                       scale, heads, dim_head, kv_tile, nk_valid, apply_mask,
                       mxu_dtype):
    ki = pl.program_id(2)
    inner = heads * dim_head

    @pl.when(ki == 0)
    def _():
        m_sc[...] = jnp.full_like(m_sc, _NEG_INF)
        l_sc[...] = jnp.zeros_like(l_sc)
        acc_sc[...] = jnp.zeros_like(acc_sc)

    q = q_ref[0]       # (tq, inner)          bf16
    kv = kv_ref[0]     # (tkv, 2*inner)       bf16 : [K | V]

    if apply_mask:     # static gate: only built when kv padding actually exists
        col = ki * kv_tile + lax.broadcasted_iota(jnp.int32, (1, kv_tile), 1)
        valid = col < nk_valid                     # (1, tkv), shared by all heads

    for h in range(heads):   # static unroll; per-head slices at static lane offsets
        lo = h * dim_head
        qh = q[:, lo:lo + dim_head].astype(mxu_dtype)
        kh = kv[:, lo:lo + dim_head].astype(mxu_dtype)
        vh = kv[:, inner + lo:inner + lo + dim_head].astype(mxu_dtype)

        s = lax.dot_general(qh, kh, (((1,), (1,)), ((), ())),
                            preferred_element_type=jnp.float32) * scale   # f32 scores
        if apply_mask:
            s = jnp.where(valid, s, _NEG_INF)

        m_prev = m_sc[h]                                   # (tq, 1) f32
        m_new = jnp.maximum(m_prev, s.max(axis=-1, keepdims=True))
        alpha = jnp.exp(m_prev - m_new)
        p = jnp.exp(s - m_new)                             # f32 softmax numerics
        l_sc[h] = alpha * l_sc[h] + p.sum(axis=-1, keepdims=True)
        acc_sc[h] = alpha * acc_sc[h] + jnp.dot(
            p.astype(mxu_dtype), vh, preferred_element_type=jnp.float32)
        m_sc[h] = m_new

    @pl.when(ki == pl.num_programs(2) - 1)
    def _():
        # One lane-dense store of the whole (tq, inner) output tile.
        o_ref[0] = jnp.concatenate(
            [acc_sc[h] * pl.reciprocal(l_sc[h], approx=True) for h in range(heads)],
            axis=-1).astype(o_ref.dtype)


def flash_attention(q, kv, *, heads, dim_head, scale, mxu_dtype=jnp.bfloat16):
    """q: (B, Nq, heads*dim_head), kv: (B, Nk, 2*heads*dim_head) -> (B, Nq, heads*dim_head)."""
    B, Nq, inner = q.shape
    _, Nk, inner2 = kv.shape
    assert inner == heads * dim_head and inner2 == 2 * inner

    Nqp, tq = _pick_tile(Nq, 512, 8)

    kv_isz = jnp.dtype(kv.dtype).itemsize
    if 2 * Nk * inner2 * kv_isz <= (16 << 20):
        Nkp, tkv = Nk, Nk            # single resident K|V block: no pad, no mask,
    else:                            # no re-DMA of K/V across q tiles of a batch.
        Nkp, tkv = _pick_tile(Nk, 512, 128)
    apply_mask = Nkp != Nk

    qp = q if Nqp == Nq else jnp.pad(q, ((0, 0), (0, Nqp - Nq), (0, 0)))
    kvp = kv if Nkp == Nk else jnp.pad(kv, ((0, 0), (0, Nkp - Nk), (0, 0)))

    q_isz = jnp.dtype(q.dtype).itemsize
    vmem = _vmem_limit(2 * tq * inner * q_isz, 2 * tkv * inner2 * kv_isz,
                       2 * tq * inner * q_isz, tq * inner * 4, 2 * heads * tq * 4)

    kernel = functools.partial(
        _flash_attn_kernel, scale=float(scale), heads=heads, dim_head=dim_head,
        kv_tile=tkv, nk_valid=Nk, apply_mask=apply_mask, mxu_dtype=mxu_dtype)

    out = pl.pallas_call(
        kernel,
        out_shape=jax.ShapeDtypeStruct((B, Nqp, inner), q.dtype),
        grid_spec=pltpu.PrefetchScalarGridSpec(
            num_scalar_prefetch=0,
            grid=(B, Nqp // tq, Nkp // tkv),
            in_specs=[
                pl.BlockSpec((1, tq, inner), lambda b, qi, ki: (b, qi, 0)),
                pl.BlockSpec((1, tkv, inner2), lambda b, qi, ki: (b, ki, 0)),
            ],
            out_specs=pl.BlockSpec((1, tq, inner), lambda b, qi, ki: (b, qi, 0)),
            scratch_shapes=[pltpu.VMEM((heads, tq, 1), jnp.float32),
                            pltpu.VMEM((heads, tq, 1), jnp.float32),
                            pltpu.VMEM((heads, tq, dim_head), jnp.float32)],
        ),
        compiler_params=pltpu.CompilerParams(
            dimension_semantics=("parallel", "parallel", "arbitrary"),
            vmem_limit_bytes=vmem),
    )(qp, kvp)
    if Nqp != Nq:
        out = out[:, :Nq, :]
    return out


# -----------------------------------------------------------------------------
# CrossAttention forward
# -----------------------------------------------------------------------------
def prepare_params(wq, wk, wv, wo, bo, *, param_dtype=jnp.bfloat16):
    """One-time weight prep (hoisted): PyTorch (out,in) -> (in,out) transpose, fuse
    the K and V projections into one wide operand, store MXU weights in bf16."""
    return dict(
        wq_t=wq.T.astype(param_dtype),                                   # (Dq, inner)
        wkv_t=jnp.concatenate([wk.T, wv.T], axis=1).astype(param_dtype), # (Dc, 2*inner)
        wo_t=wo.T.astype(param_dtype),                                   # (inner, Dq)
        bo=bo.astype(jnp.float32),                                       # (Dq,)
    )


def cross_attention(x, context=None, *, params, heads, dim_head):
    """x: (B, Nq, query_dim), context: (B, Nk, context_dim) or None -> (B, Nq, query_dim)."""
    # TODO(synk): optional boolean attention `mask` argument and nn.Dropout are not
    # implemented (dropout is identity at inference / p=0).
    if context is None:
        context = x
    B, Nq, Dq = x.shape
    _, Nk, Dc = context.shape
    inner = heads * dim_head
    scale = dim_head ** (-0.5)

    x2d = x.reshape(B * Nq, Dq)
    c2d = context.reshape(B * Nk, Dc)

    # Projections write bf16 activations (halves HBM traffic into attention).
    q = linear(x2d, params["wq_t"], out_dtype=jnp.bfloat16).reshape(B, Nq, inner)
    kv = linear(c2d, params["wkv_t"], out_dtype=jnp.bfloat16).reshape(B, Nk, 2 * inner)

    # Attention directly in (B, N, heads*dim_head) layout: no head transposes,
    # no dim_head padding, K|V consumed fused.
    o = flash_attention(q, kv, heads=heads, dim_head=dim_head, scale=scale)

    out2d = linear(o.reshape(B * Nq, inner), params["wo_t"], params["bo"],
                   out_dtype=x.dtype)                                    # to_out[0]
    return out2d.reshape(B, Nq, Dq)


# -----------------------------------------------------------------------------
if __name__ == "__main__":
    key = jax.random.PRNGKey(0)
    ks = jax.random.split(key, 7)

    batch, q_seq, ctx_seq = 2, 8, 16
    query_dim = context_dim = 32
    heads, dim_head = 4, 16
    inner = heads * dim_head                      # 64

    # Deterministic synthetic parameters (PyTorch nn.Linear layouts).
    bq = 1.0 / math.sqrt(query_dim)
    bc = 1.0 / math.sqrt(context_dim)
    bi = 1.0 / math.sqrt(inner)
    wq = jax.random.uniform(ks[0], (inner, query_dim), minval=-bq, maxval=bq, dtype=jnp.float32)
    wk = jax.random.uniform(ks[1], (inner, context_dim), minval=-bc, maxval=bc, dtype=jnp.float32)
    wv = jax.random.uniform(ks[2], (inner, context_dim), minval=-bc, maxval=bc, dtype=jnp.float32)
    wo = jax.random.uniform(ks[3], (query_dim, inner), minval=-bi, maxval=bi, dtype=jnp.float32)
    bo = jax.random.uniform(ks[4], (query_dim,), minval=-bi, maxval=bi, dtype=jnp.float32)

    x = jax.random.normal(ks[5], (batch, q_seq, query_dim), dtype=jnp.float32)
    context = jax.random.normal(ks[6], (batch, ctx_seq, context_dim), dtype=jnp.float32)

    params = prepare_params(wq, wk, wv, wo, bo)   # hoisted one-time layout/dtype prep

    y = cross_attention(x, context, params=params, heads=heads, dim_head=dim_head)
    y = jax.block_until_ready(y)
    assert y.shape == (batch, q_seq, query_dim), y.shape

    # Pure-JAX f32 reference (mirrors the PyTorch forward).
    q_r = x @ wq.T
    k_r = context @ wk.T
    v_r = context @ wv.T

    def split_heads(t):
        b, n, _ = t.shape
        return t.reshape(b, n, heads, dim_head).transpose(0, 2, 1, 3)

    qh_r, kh_r, vh_r = map(split_heads, (q_r, k_r, v_r))
    sim = jnp.einsum("bhid,bhjd->bhij", qh_r, kh_r) * (dim_head ** -0.5)
    attn = jax.nn.softmax(sim, axis=-1)
    oh_r = jnp.einsum("bhij,bhjd->bhid", attn, vh_r)
    o_r = oh_r.transpose(0, 2, 1, 3).reshape(batch, q_seq, inner)
    ref = o_r @ wo.T + bo

    # bf16 MXU operands / bf16 intermediate activations vs f32 reference.
    err = float(jnp.max(jnp.abs(y - ref)))
    assert jnp.allclose(y, ref, atol=4e-2, rtol=4e-2), err

    print("KERNEL_OK")
</pallas_src>

<mosaic_0001>
module attributes {stable_mosaic.version = 11 : i64} {
  func.func @_matmul_bias_kernel(%arg0: i32, %arg1: i32, %arg2: i32, %arg3: memref<16x128xf32, #tpu.memory_space<vmem>>, %arg4: memref<128x128xbf16, #tpu.memory_space<vmem>>, %arg5: memref<1x128xf32, #tpu.memory_space<vmem>>, %arg6: memref<16x128xbf16, #tpu.memory_space<vmem>>, %arg7: memref<16x128xf32, #tpu.memory_space<vmem>>) attributes {dimension_semantics = [#tpu.dimension_semantics<parallel>, #tpu.dimension_semantics<parallel>, #tpu.dimension_semantics<arbitrary>], iteration_bounds = array<i64: 1, 1, 1>, scalar_prefetch = 0 : i64, scratch_operands = 1 : i64, tpu.core_type = #tpu.core_type<tc>, window_params = [{transform_indices = @transform_0, window_bounds = array<i64: 16, 128>}, {transform_indices = @transform_1, window_bounds = array<i64: 128, 128>}, {transform_indices = @transform_2, window_bounds = array<i64: 1, 128>}, {transform_indices = @transform_3, window_bounds = array<i64: 16, 128>}]} {
    %c0_i32 = arith.constant 0 : i32
    %0 = arith.cmpi eq, %arg2, %c0_i32 : i32
    %1 = arith.extui %0 : i1 to i32
    %c0_i32_0 = arith.constant 0 : i32
    %2 = arith.cmpi ne, %1, %c0_i32_0 : i32
    scf.if %2 {
      %cst_10 = arith.constant 0.000000e+00 : f32
      %13 = vector.broadcast %cst_10 : f32 to vector<16x128xf32>
      %c0_11 = arith.constant 0 : index
      %c0_12 = arith.constant 0 : index
      %14 = vector.load %arg7[%c0_11, %c0_12] : memref<16x128xf32, #tpu.memory_space<vmem>>, vector<16x128xf32>
      tpu.vector_store %arg7[%c0_11, %c0_12], %13 {strides = array<i32>} : memref<16x128xf32, #tpu.memory_space<vmem>>, vector<16x128xf32>,
    } else {
    }
    %c0 = arith.constant 0 : index
    %c0_1 = arith.constant 0 : index
    %3 = vector.load %arg7[%c0, %c0_1] : memref<16x128xf32, #tpu.memory_space<vmem>>, vector<16x128xf32>
    %c0_2 = arith.constant 0 : index
    %c0_3 = arith.constant 0 : index
    %4 = vector.load %arg3[%c0_2, %c0_3] : memref<16x128xf32, #tpu.memory_space<vmem>>, vector<16x128xf32>
    %5 = arith.truncf %4 : vector<16x128xf32> to vector<16x128xbf16>
    %c0_4 = arith.constant 0 : index
    %c0_5 = arith.constant 0 : index
    %6 = vector.load %arg4[%c0_4, %c0_5] : memref<128x128xbf16, #tpu.memory_space<vmem>>, vector<128x128xbf16>
    %cst = arith.constant dense<0.000000e+00> : vector<16x128xf32>
    %7 = tpu.matmul %5, %6, %cst {dimension_numbers = #tpu.dot_dimension_numbers<[1], [0], [0], [1], [0, 0, 1, 1], [], []>} : vector<16x128xbf16>, vector<128x128xbf16>, vector<16x128xf32> -> vector<16x128xf32>
    %8 = arith.addf %3, %7 : vector<16x128xf32>
    %c0_6 = arith.constant 0 : index
    %c0_7 = arith.constant 0 : index
    %9 = vector.load %arg7[%c0_6, %c0_7] : memref<16x128xf32, #tpu.memory_space<vmem>>, vector<16x128xf32>
    tpu.vector_store %arg7[%c0_6, %c0_7], %8 {strides = array<i32>} : memref<16x128xf32, #tpu.memory_space<vmem>>, vector<16x128xf32>,
    %c0_i32_8 = arith.constant 0 : i32
    %10 = arith.cmpi eq, %arg2, %c0_i32_8 : i32
    %11 = arith.extui %10 : i1 to i32
    %c0_i32_9 = arith.constant 0 : i32
    %12 = arith.cmpi ne, %11, %c0_i32_9 : i32
    scf.if %12 {
      %c0_10 = arith.constant 0 : index
      %c0_11 = arith.constant 0 : index
      %13 = vector.load %arg7[%c0_10, %c0_11] : memref<16x128xf32, #tpu.memory_space<vmem>>, vector<16x128xf32>
      %c0_12 = arith.constant 0 : index
      %c0_13 = arith.constant 0 : index
      %14 = vector.load %arg5[%c0_12, %c0_13] : memref<1x128xf32, #tpu.memory_space<vmem>>, vector<1x128xf32>
      %15 = vector.broadcast %14 : vector<1x128xf32> to vector<16x128xf32>
      %16 = arith.addf %13, %15 : vector<16x128xf32>
      %17 = arith.truncf %16 : vector<16x128xf32> to vector<16x128xbf16>
      %c0_14 = arith.constant 0 : index
      %c0_15 = arith.constant 0 : index
      %18 = vector.load %arg6[%c0_14, %c0_15] : memref<16x128xbf16, #tpu.memory_space<vmem>>, vector<16x128xbf16>
      tpu.vector_store %arg6[%c0_14, %c0_15], %17 {strides = array<i32>} : memref<16x128xbf16, #tpu.memory_space<vmem>>, vector<16x128xbf16>,
    } else {
    }
    return
  }
  func.func @transform_0(%arg0: i32, %arg1: i32, %arg2: i32) -> (i32, i32) {
    %c0_i32 = arith.constant 0 : i32
    return %arg0, %arg2 : i32, i32
  }
  func.func @transform_1(%arg0: i32, %arg1: i32, %arg2: i32) -> (i32, i32) {
    %c0_i32 = arith.constant 0 : i32
    return %arg2, %arg1 : i32, i32
  }
  func.func @transform_2(%arg0: i32, %arg1: i32, %arg2: i32) -> (i32, i32) {
    %c0_i32 = arith.constant 0 : i32
    %c0_i32_0 = arith.constant 0 : i32
    return %c0_i32, %arg1 : i32, i32
  }
  func.func @transform_3(%arg0: i32, %arg1: i32, %arg2: i32) -> (i32, i32) {
    %c0_i32 = arith.constant 0 : i32
    return %arg0, %arg1 : i32, i32
  }
}

</mosaic_0001>

<bundles_post_ra>
// kernel: tpu_custom_call.1
= control target key start
LH: loop header
LB: loop body
LE: loop exit
PB: predicated region body
PF: predicated region fallthrough
CT: control target
= control target key end

     0   :  { %8 = vsyncpa [#allocation4], 0  ;;  %s383_s0 = inlined_call_operand.hbm [shape: f32[16,128], index: 0, kind: input, shape index: {}]   ;;  %s384_s1 = inlined_call_operand.hbm [shape: bf16[128,128], index: 1, kind: input, shape index: {}]   ;;  %s385_s2 = inlined_call_operand.vmem [shape: f32[1,128], index: 2, kind: input, shape index: {}]   ;;  %s386_s3 = inlined_call_operand.hbm [shape: bf16[16,128], index: 3, kind: output, shape index: {}]  }
   0x1   :  { %9 = vsyncpa [#allocation7], 0 }
   0x2   :  { %10 = vsyncpa [#allocation5], 0  ;;  %s336_s12 = smov [#allocation3]  }
   0x3   :  { %s16_s13 = sshll.u32 %s336_s12, 4  ;;  %s17_s13 = int_to_ptr.vmem [resolvable:$true] %s16_s13 }
   0x4   :  { %s278_s14 = scalar_lea.vmem %s17_s13, 256  ;;  %p283_p1 = scmp.lt.s32.totalorder %s17_s13, %s17_s13 }
   0x5   :  { %p279_p0 = scmp.ne.s32.totalorder %s17_s13, %s278_s14  ;;  %p284_p2 = scmp.lt.s32.totalorder %s278_s14, %s278_s14 }
   0x7   :  { %p285_p3 = por %p284_p2, %p283_p1 }
   0x9   :  { %p286_p4 = pnand %p285_p3, %p279_p0 }
   0xb   :  { %289 = shalt.err (!%p286_p4)
}
   0xc   :  { %s337_s15 = smov 128   ;;  %s338_s16 = smov 8  }
   0xd   :  { %22 = dma.hbm_to_vmem [thread:$0]  %s383_s0, 256, %s17_s13, [#allocation4], %s337_s15, %s337_s15, %s338_s16  }
   0xe   :  { %s339_s19 = smov [#allocation6]  }
   0xf   :  { %s28_s20 = sshll.u32 %s339_s19, 4  ;;  %s29_s20 = int_to_ptr.vmem [resolvable:$true] %s28_s20 }
  0x10   :  { %s298_s21 = scalar_lea.vmem %s29_s20, 1024  ;;  %p303_p6 = scmp.lt.s32.totalorder %s29_s20, %s29_s20 }
  0x11   :  { %p299_p5 = scmp.ne.s32.totalorder %s29_s20, %s298_s21  ;;  %p304_p7 = scmp.lt.s32.totalorder %s298_s21, %s298_s21 }
  0x13   :  { %p305_p8 = por %p304_p7, %p303_p6 }
  0x15   :  { %p306_p9 = pnand %p305_p8, %p299_p5 }
  0x17   :  { %309 = shalt.err (!%p306_p9)
}
  0x18   :  { %s340_s22 = smov 64   ;;  %s341_s23 = smov 4  }
  0x19   :  { %34 = dma.hbm_to_vmem [thread:$0]  %s384_s1, 1024, %s29_s20, [#allocation7], %s340_s22, %s340_s22, %s341_s23  }
  0x1a   :  { %330 = dma.done.wait [#allocation4], 256  }
  0x1b   :  { %331 = vsyncadd [#allocation4], 4294967040 }
  0x1c   :  { %332 = dma.done.wait [#allocation7], 1024  }
  0x1d   :  { %333 = vsyncadd [#allocation7], 4294966272  ;;  %v342_v0 = vmov 0.0   ;;  %vm343_vm0 = vmmov 0   ;;  %v262_v1 = vld [vmem:[#allocation6 + $0x38] sm:$0xff]   ;;  %v263_v2 = vld [vmem:[#allocation6 + $0x30] sm:$0xff]  }
  0x1e   :  { %233 = vmatprep.subr.bf16.mxu0 %v342_v0  ;;  %249 = vmatprep.mubr.msk.bf16.mxu0 %vm343_vm0, %v342_v0  ;;  %v264_v3 = vld [vmem:[#allocation6 + $0x28] sm:$0xff]   ;;  %v265_v4 = vld [vmem:[#allocation6 + $0x20] sm:$0xff]   ;;  %v266_v5 = vld [vmem:[#allocation6 + $0x18] sm:$0xff]   ;;  %s344_s26 = smov [#allocation8]  }
  0x1f   :  { %234 = vmatpush3.bf16.msra.mxu0 %v262_v1  ;;  %v267_v6 = vld [vmem:[#allocation6 + $0x10] sm:$0xff]   ;;  %v268_v7 = vld [vmem:[#allocation6 + $0x8] sm:$0xff]   ;;  %v269_v8 = vld [vmem:[#allocation6] sm:$0xff]   ;;  %s193_s27 = sshll.u32 %s344_s26, 4  ;;  %s194_s27 = int_to_ptr.vmem [resolvable:$true] %s193_s27 }
  0x20   :  { %235 = vmatprep.subr.bf16.mxu0 %v342_v0  ;;  %v52_v9 = vld [vmem:[#allocation3] sm:$0xff]  ;;  %v53_v10 = vld [vmem:[#allocation3 + $0x8] sm:$0xff]  ;;  %s310_s28 = scalar_lea.vmem %s194_s27, 128  ;;  %p315_p11 = scmp.lt.s32.totalorder %s194_s27, %s194_s27 }
  0x21   :  { %v54_v11 = vpack.c.bf16 %v53_v10, %v52_v9  ;;  %v214_v13 = vld [vmem:[%s385_s2] ss:$0 sm:$0xff]  ;;  %p311_p10 = scmp.ne.s32.totalorder %s194_s27, %s310_s28  ;;  %p316_p12 = scmp.lt.s32.totalorder %s310_s28, %s310_s28 }
  0x23   :  { %236 = vmatpush3.bf16.msra.mxu0 %v263_v2  ;;  %p317_p13 = por %p316_p12, %p315_p11 }
  0x24   :  { %237 = vmatprep.subr.bf16.mxu0 %v342_v0 }
  0x25   :  { %p318_p0 = pnand %p317_p13, %p311_p10 }
  0x27   :  { %238 = vmatpush3.bf16.msra.mxu0 %v264_v3 }
  0x28   :  { %239 = vmatprep.subr.bf16.mxu0 %v342_v0 }
  0x2b   :  { %240 = vmatpush3.bf16.msra.mxu0 %v265_v4 }
  0x2c   :  { %241 = vmatprep.subr.bf16.mxu0 %v342_v0 }
  0x2f   :  { %242 = vmatpush3.bf16.msra.mxu0 %v266_v5 }
  0x30   :  { %243 = vmatprep.subr.bf16.mxu0 %v342_v0 }
  0x33   :  { %244 = vmatpush3.bf16.msra.mxu0 %v267_v6 }
  0x34   :  { %245 = vmatprep.subr.bf16.mxu0 %v342_v0 }
  0x37   :  { %246 = vmatpush3.bf16.msra.mxu0 %v268_v7 }
  0x38   :  { %247 = vmatprep.subr.bf16.mxu0 %v342_v0 }
  0x3b   :  { %248 = vmatpush3.bf16.msra.mxu0 %v269_v8 }
  0x3e   :  { %250 = vmatmul.mubr.bf16.vlgmr.msra.gmra.mxu0 %v54_v11 }
  0xfe   :  { %v153_v12 = vpop.f32.mrf.mxu0 }
  0xff   :  { %v176_v16 = vadd.f32 %v214_v13, %v153_v12 }
 0x100   :  { %v251_v14 = vpop.f32.mrf.mxu0 }
 0x102   :  { %v156_v15 = vpop.f32.mrf.mxu0 }
 0x103   :  { %v177_v17 = vadd.f32 %v214_v13, %v156_v15 }
 0x104   :  { %v252_v18 = vpop.f32.mrf.mxu0 }
 0x105   :  { %v222_v19 = vpack.c.bf16 %v177_v17, %v176_v16 }
 0x107   :  { %223 = vst [vmem:[#allocation8] sm:$0xff] %v222_v19  }
 0x108   :  { %321 = shalt.err (!%p318_p0)
}
 0x109   :  { %199 = dma.vmem_to_hbm [thread:$0]  %s194_s27, 128, %s386_s3, [#allocation5], %s340_s22, %s340_s22, %s341_s23  }
 0x10a   :  { %334 = dma.done.wait [#allocation5], 128  }
 0x10b   :  { %335 = vsyncadd [#allocation5], 4294967168 }
 0x10c   :  { %203 = vsyncpa [#allocation4], 1 }
 0x10d   :  { %204 = vsyncpa [#allocation7], 1 }
 0x10e   :  { %205 = vsyncpa [#allocation5], 1 }

</bundles_post_ra>
